<compile_context>
chip_gen: v6e
topology: v6e:2x2x1
jax: 0.10.0
libtpu: 0.0.40
codegen_flags: <defaults>
</compile_context>

<pallas_src>
import math
from functools import partial

import numpy as np
import jax
import jax.numpy as jnp
from jax import lax
from jax.experimental import pallas as pl
from jax.experimental.pallas import tpu as pltpu

# ---- small, deterministic stand-ins for ResNetConfig / DataConfig -----------
CHANNELS_ORDERING = (8, 16, 32, 64)   # scaled-down version of (64,128,256,512)
EXPANSION = 4                          # BottleneckBlock.expansion
INPUT_CHANNELS = 3                     # DataConfig.INPUT_CHANNELS
BN_EPS = 1e-5
LAYERS = (3, 4, 6, 3)                  # ResNet-50 block counts
LANE = 128                             # channel padding target (lane width)

_VMEM_LIMIT = 32 * 1024 * 1024         # safe on v5e/v6e/v7x


def _cpad(c):
    return ((c + LANE - 1) // LANE) * LANE


# =============================== Pallas kernels ===============================
def _mm_bn_act_kernel(a_ref, b_ref, s_ref, c_ref, o_ref, *, relu):
    """(TM, K) @ (K, Coutp) on the MXU + per-channel scale/bias (+ ReLU)."""
    a = a_ref[...].astype(jnp.bfloat16)
    acc = jnp.dot(a, b_ref[...], preferred_element_type=jnp.float32)
    acc = acc * s_ref[...] + c_ref[...]
    if relu:
        acc = jnp.maximum(acc, 0.0)
    o_ref[...] = acc.astype(o_ref.dtype)


def _bottleneck_kernel(*refs, G, H, W, stride, has_ds, Wp):
    """Whole bottleneck block for G images, all intermediates kept in VMEM."""
    (x_ref, w1_ref, s1_ref, b1_ref, w2_ref, s2_ref, b2_ref,
     w3_ref, s3_ref, b3_ref) = refs[:10]
    idx = 10
    if has_ds:
        wd_ref, sd_ref, bd_ref = refs[idx:idx + 3]
        idx += 3
    if stride > 1:
        ssub_ref = refs[idx]
        idx += 1
    o_ref, buf_ref = refs[idx], refs[idx + 1]

    HW = H * W
    OH = (H - 1) // stride + 1
    OW = (W - 1) // stride + 1
    OHW = OH * OW
    PAD = ((W + 1 + 7) // 8) * 8          # sublane-aligned zero halo

    # column masks for the horizontally shifted taps (flat-layout wraparound)
    col = lax.broadcasted_iota(jnp.int32, (HW, 1), 0) % W
    not_first_col = col != 0              # kj == 0 taps
    not_last_col = col != (W - 1)         # kj == 2 taps

    w1 = w1_ref[...]
    w3 = w3_ref[...]
    s1, b1 = s1_ref[...], b1_ref[...]
    s2, b2 = s2_ref[...], b2_ref[...]
    s3, b3 = s3_ref[...], b3_ref[...]

    # zero the halo once; the centre is rewritten for every image below.
    buf_ref[...] = jnp.zeros((HW + 2 * PAD, Wp), jnp.float32)

    for g in range(G):                    # static unroll over images in block
        x = x_ref[g * HW:(g + 1) * HW, :]

        # ---- conv1 (1x1) + bn1 + relu ------------------------------------
        h1 = jnp.dot(x.astype(jnp.bfloat16), w1,
                     preferred_element_type=jnp.float32)
        h1 = jnp.maximum(h1 * s1 + b1, 0.0)

        # ---- conv2 (3x3, pad 1) as in-VMEM 9-tap accumulation -------------
        buf_ref[PAD:PAD + HW, :] = h1
        acc2 = jnp.zeros((HW, Wp), jnp.float32)
        for ki in range(3):
            for kj in range(3):
                d = (ki - 1) * W + (kj - 1)
                tap = buf_ref[PAD + d:PAD + d + HW, :]
                if kj == 0:
                    tap = jnp.where(not_first_col, tap, 0.0)
                elif kj == 2:
                    tap = jnp.where(not_last_col, tap, 0.0)
                acc2 = acc2 + jnp.dot(tap.astype(jnp.bfloat16),
                                      w2_ref[ki * 3 + kj],
                                      preferred_element_type=jnp.float32)
        if stride > 1:                     # exact 0/1 row selection (f32)
            acc2 = jnp.dot(ssub_ref[...], acc2,
                           preferred_element_type=jnp.float32)
        h2 = jnp.maximum(acc2 * s2 + b2, 0.0)

        # ---- identity / downsample ----------------------------------------
        if has_ds:
            xs = x
            if stride > 1:
                xs = jnp.dot(ssub_ref[...], xs,
                             preferred_element_type=jnp.float32)
            identity = jnp.dot(xs.astype(jnp.bfloat16), wd_ref[...],
                               preferred_element_type=jnp.float32)
            identity = identity * sd_ref[...] + bd_ref[...]
        else:
            identity = x

        # ---- conv3 (1x1) + bn3 + residual + relu ---------------------------
        out = jnp.dot(h2.astype(jnp.bfloat16), w3,
                      preferred_element_type=jnp.float32)
        out = jnp.maximum(out * s3 + b3 + identity, 0.0)
        o_ref[g * OHW:(g + 1) * OHW, :] = out.astype(o_ref.dtype)


# =============================== kernel wrappers ==============================
def _pick_tm(m):
    for tm in (512, 256, 128, 64, 32, 16, 8):
        if m % tm == 0:
            return tm
    return m


def fused_matmul_bn_act(a, b_bf16, scale, bias, *, relu, tm):
    """a:(M,K) f32, b:(K,Coutp) bf16, scale/bias:(1,Coutp) f32 -> (M,Coutp)."""
    M, K = a.shape
    Coutp = b_bf16.shape[1]
    grid = (M // tm,)
    return pl.pallas_call(
        partial(_mm_bn_act_kernel, relu=relu),
        out_shape=jax.ShapeDtypeStruct((M, Coutp), jnp.float32),
        grid=grid,
        in_specs=[
            pl.BlockSpec((tm, K), lambda i: (i, 0)),
            pl.BlockSpec((K, Coutp), lambda i: (0, 0)),
            pl.BlockSpec((1, Coutp), lambda i: (0, 0)),
            pl.BlockSpec((1, Coutp), lambda i: (0, 0)),
        ],
        out_specs=pl.BlockSpec((tm, Coutp), lambda i: (i, 0)),
        compiler_params=pltpu.CompilerParams(
            dimension_semantics=("parallel",),
            vmem_limit_bytes=_VMEM_LIMIT),
    )(a, b_bf16, scale, bias)


def _subsample_matrix(H, W, stride):
    """0/1 selection matrix picking the stride-subsampled spatial positions."""
    OH = (H - 1) // stride + 1
    OW = (W - 1) // stride + 1
    sel = np.zeros((OH * OW, H * W), np.float32)
    for oh in range(OH):
        for ow in range(OW):
            sel[oh * OW + ow, (oh * stride) * W + ow * stride] = 1.0
    return jnp.asarray(sel)


def bottleneck_block(x_flat, blk, *, N, H, W):
    """x_flat: (N*H*W, Cinp) f32 -> (N*OH*OW, Coutp) f32 in one pallas_call."""
    stride = blk["stride"]
    has_ds = blk["downsample"] is not None
    Cinp = x_flat.shape[1]
    Wp = blk["w1"].shape[1]
    Coutp = blk["w3"].shape[1]
    HW = H * W
    OH = (H - 1) // stride + 1
    OW = (W - 1) // stride + 1
    OHW = OH * OW

    # one image per grid step when the tile rows stay sublane-aligned,
    # otherwise fold the whole (tiny) batch into a single grid step.
    G = 1 if (HW % 8 == 0 and OHW % 8 == 0) else N
    grid = (N // G,)
    PAD = ((W + 1 + 7) // 8) * 8

    def full(shape):
        nd = len(shape)
        return pl.BlockSpec(shape, lambda i: (0,) * nd)

    in_specs = [pl.BlockSpec((G * HW, Cinp), lambda i: (i, 0)),
                full(blk["w1"].shape), full(blk["s1"].shape), full(blk["b1"].shape),
                full(blk["w2"].shape), full(blk["s2"].shape), full(blk["b2"].shape),
                full(blk["w3"].shape), full(blk["s3"].shape), full(blk["b3"].shape)]
    args = [x_flat, blk["w1"], blk["s1"], blk["b1"],
            blk["w2"], blk["s2"], blk["b2"],
            blk["w3"], blk["s3"], blk["b3"]]
    if has_ds:
        d = blk["downsample"]
        in_specs += [full(d["w"].shape), full(d["s"].shape), full(d["b"].shape)]
        args += [d["w"], d["s"], d["b"]]
    if stride > 1:
        ssub = _subsample_matrix(H, W, stride)
        in_specs.append(full(ssub.shape))
        args.append(ssub)

    kernel = partial(_bottleneck_kernel, G=G, H=H, W=W, stride=stride,
                     has_ds=has_ds, Wp=Wp)
    out = pl.pallas_call(
        kernel,
        out_shape=jax.ShapeDtypeStruct((N * OHW, Coutp), jnp.float32),
        grid=grid,
        in_specs=in_specs,
        out_specs=pl.BlockSpec((G * OHW, Coutp), lambda i: (i, 0)),
        scratch_shapes=[pltpu.VMEM((HW + 2 * PAD, Wp), jnp.float32)],
        compiler_params=pltpu.CompilerParams(
            dimension_semantics=("parallel",),
            vmem_limit_bytes=_VMEM_LIMIT),
    )(*args)
    return out, OH, OW


# ================================ stem / pooling ==============================
def _im2col(x_nhwc, kh, kw, stride, padding):
    N, H, W, C = x_nhwc.shape
    xp = jnp.pad(x_nhwc, ((0, 0), (padding, padding), (padding, padding), (0, 0)))
    OH = (H + 2 * padding - kh) // stride + 1
    OW = (W + 2 * padding - kw) // stride + 1
    cols = []
    for i in range(kh):
        for j in range(kw):
            cols.append(xp[:, i:i + stride * (OH - 1) + 1:stride,
                              j:j + stride * (OW - 1) + 1:stride, :])
    patches = jnp.concatenate(cols, axis=-1)                # (N, OH, OW, kh*kw*C)
    return patches.reshape(N * OH * OW, kh * kw * C), OH, OW


def _stem_forward(x_nhwc, stem):
    # 7x7 / stride 2 / pad 3 conv + BN + ReLU (im2col is one-off & tiny).
    patches, OH, OW = _im2col(x_nhwc, 7, 7, 2, 3)
    x1 = fused_matmul_bn_act(patches, stem["w"], stem["s"], stem["b"],
                             relu=True, tm=_pick_tm(patches.shape[0]))
    return x1, OH, OW


# =========================== parameter construction ===========================
def _kaiming_oihw(key, cout, cin, kh, kw):
    fan_out = cout * kh * kw                       # kaiming_normal_(mode='fan_out')
    std = math.sqrt(2.0 / fan_out)
    return jax.random.normal(key, (cout, cin, kh, kw), jnp.float32) * std


def _pad2(m, rows, cols):
    return jnp.pad(m, ((0, rows - m.shape[0]), (0, cols - m.shape[1])))


def _bn_scale_bias(cp):
    s = jnp.full((1, cp), 1.0 / math.sqrt(1.0 + BN_EPS), jnp.float32)
    b = jnp.zeros((1, cp), jnp.float32)
    return s, b


def _conv1x1_params(key, cin, cout):
    w = _kaiming_oihw(key, cout, cin, 1, 1)
    mat = w[:, :, 0, 0].T                                   # (cin, cout)
    wp = _pad2(mat, _cpad(cin), _cpad(cout)).astype(jnp.bfloat16)
    s, b = _bn_scale_bias(_cpad(cout))
    return w, wp, s, b


def init_params(key):
    keys = iter(jax.random.split(key, 128))
    p = {}
    inplanes = CHANNELS_ORDERING[0] // 2

    # stem conv (7x7, stride 2) weights pre-reshaped to (KH*KW*Cin, Coutp) bf16
    w_stem = _kaiming_oihw(next(keys), inplanes, INPUT_CHANNELS, 7, 7)
    stem_mat = jnp.transpose(w_stem, (2, 3, 1, 0)).reshape(49 * INPUT_CHANNELS,
                                                           inplanes)
    s, b = _bn_scale_bias(_cpad(inplanes))
    p["stem"] = dict(
        w=_pad2(stem_mat, stem_mat.shape[0], _cpad(inplanes)).astype(jnp.bfloat16),
        s=s, b=b, cout=inplanes, raw_w=w_stem)

    layers = []
    for li, (planes, nblocks) in enumerate(zip(CHANNELS_ORDERING, LAYERS)):
        layer_stride = 1 if li == 0 else 2
        blocks = []
        for bi in range(nblocks):
            stride = layer_stride if bi == 0 else 1
            width = planes                     # base_width == CHANNELS_ORDERING[0]
            outp = planes * EXPANSION

            w1_raw, w1, s1, b1 = _conv1x1_params(next(keys), inplanes, width)
            w2_raw = _kaiming_oihw(next(keys), width, width, 3, 3)
            w2_taps = jnp.transpose(w2_raw, (2, 3, 1, 0)).reshape(9, width, width)
            w2 = jnp.pad(w2_taps, ((0, 0), (0, _cpad(width) - width),
                                   (0, _cpad(width) - width))).astype(jnp.bfloat16)
            s2, b2 = _bn_scale_bias(_cpad(width))
            w3_raw, w3, s3, b3 = _conv1x1_params(next(keys), width, outp)

            blk = dict(w1=w1, s1=s1, b1=b1, w2=w2, s2=s2, b2=b2,
                       w3=w3, s3=s3, b3=b3, stride=stride, downsample=None,
                       raw=dict(w1=w1_raw, w2=w2_raw, w3=w3_raw, wd=None,
                                stride=stride))
            if bi == 0 and (stride != 1 or inplanes != outp):
                wd_raw, wd, sd, bd = _conv1x1_params(next(keys), inplanes, outp)
                blk["downsample"] = dict(w=wd, s=sd, b=bd)
                blk["raw"]["wd"] = wd_raw
            blocks.append(blk)
            inplanes = outp
        layers.append(blocks)
    p["layers"] = layers

    # undo_bottleneck: plain 1x1 conv WITH bias, no norm (PyTorch default init).
    cin = CHANNELS_ORDERING[-1] * EXPANSION
    cout = CHANNELS_ORDERING[-1]
    k1, k2 = jax.random.split(next(keys))
    bound = 1.0 / math.sqrt(cin)
    w_undo = jax.random.uniform(k1, (cout, cin, 1, 1), jnp.float32, -bound, bound)
    b_undo = jax.random.uniform(k2, (cout,), jnp.float32, -bound, bound)
    p["undo"] = dict(
        w=_pad2(w_undo[:, :, 0, 0].T, _cpad(cin), _cpad(cout)).astype(jnp.bfloat16),
        s=jnp.ones((1, _cpad(cout)), jnp.float32),
        b=_pad2(b_undo.reshape(1, cout), 1, _cpad(cout)))
    return p


# ================================ model forward ===============================
def resnet50_unbottlenecked_forward(x_nchw, params, is_unet=False):
    N = x_nchw.shape[0]
    x_nhwc = jnp.transpose(x_nchw, (0, 2, 3, 1))            # NCHW -> NHWC

    x1_flat, H1, W1 = _stem_forward(x_nhwc, params["stem"])

    # maxpool 3x3 / stride 2 / pad 1 -- plain XLA (tiny; no Pallas benefit).
    Cp = x1_flat.shape[1]
    pooled = lax.reduce_window(
        x1_flat.reshape(N, H1, W1, Cp), -jnp.inf, lax.max,
        (1, 3, 3, 1), (1, 2, 2, 1), ((0, 0), (1, 1), (1, 1), (0, 0)))
    H = (H1 - 1) // 2 + 1
    W = (W1 - 1) // 2 + 1
    x_flat = pooled.reshape(N * H * W, Cp)

    feats = []
    for blocks in params["layers"]:
        for blk in blocks:
            x_flat, H, W = bottleneck_block(x_flat, blk, N=N, H=H, W=W)
        feats.append((x_flat, H, W))

    x5_flat, H5, W5 = feats[-1]
    u = params["undo"]
    x5u = fused_matmul_bn_act(x5_flat, u["w"], u["s"], u["b"], relu=False,
                              tm=_pick_tm(x5_flat.shape[0]))

    def to_nchw(flat, h, w, c_real):
        t = flat[:, :c_real].reshape(N, h, w, c_real)
        return jnp.transpose(t, (0, 3, 1, 2))

    x_5 = to_nchw(x5u, H5, W5, CHANNELS_ORDERING[-1])
    if is_unet:
        x_1 = to_nchw(x1_flat, H1, W1, params["stem"]["cout"])
        skips = [to_nchw(f, h, w, planes * EXPANSION)
                 for (f, h, w), planes in zip(feats[:3], CHANNELS_ORDERING[:3])]
        x_2, x_3, x_4 = skips
        return (x_5, x_1, x_2, x_3, x_4)
    return (x_5,)


# =============================== reference checks =============================
def _ref_bottleneck(x_nhwc, raw):
    """XLA reference for one block (bf16 matmul inputs, f32 accumulation)."""
    bnscale = 1.0 / math.sqrt(1.0 + BN_EPS)

    def conv(x, w_oihw, stride, padding):
        return lax.conv_general_dilated(
            x.astype(jnp.bfloat16),
            jnp.transpose(w_oihw, (2, 3, 1, 0)).astype(jnp.bfloat16),
            (stride, stride), ((padding, padding), (padding, padding)),
            dimension_numbers=("NHWC", "HWIO", "NHWC"),
            preferred_element_type=jnp.float32)

    h = jnp.maximum(conv(x_nhwc, raw["w1"], 1, 0) * bnscale, 0.0)
    h = jnp.maximum(conv(h, raw["w2"], raw["stride"], 1) * bnscale, 0.0)
    out = conv(h, raw["w3"], 1, 0) * bnscale
    if raw["wd"] is not None:
        idn = conv(x_nhwc, raw["wd"], raw["stride"], 0) * bnscale
    else:
        idn = x_nhwc
    return jnp.maximum(out + idn, 0.0)


def _run_block_padded(x_nhwc_real, blk):
    N, H, W, C = x_nhwc_real.shape
    Cinp = blk["w1"].shape[0]
    xp = jnp.pad(x_nhwc_real, ((0, 0), (0, 0), (0, 0), (0, Cinp - C)))
    out_flat, OH, OW = bottleneck_block(xp.reshape(N * H * W, Cinp), blk,
                                        N=N, H=H, W=W)
    cout = blk["raw"]["w3"].shape[0]
    return out_flat[:, :cout].reshape(N, OH, OW, cout)


# ===================================== main ===================================
if __name__ == "__main__":
    key = jax.random.PRNGKey(0)
    pkey, xkey, ckey = jax.random.split(key, 3)
    params = init_params(pkey)
    x = jax.random.normal(xkey, (2, INPUT_CHANNELS, 64, 64), jnp.float32)

    # --- check 1: fused stem matmul kernel vs lax.conv -----------------------
    x_nhwc = jnp.transpose(x, (0, 2, 3, 1))
    x1_flat, H1, W1 = _stem_forward(x_nhwc, params["stem"])
    bnscale = 1.0 / math.sqrt(1.0 + BN_EPS)
    ref1 = lax.conv_general_dilated(
        x_nhwc.astype(jnp.bfloat16),
        jnp.transpose(params["stem"]["raw_w"], (2, 3, 1, 0)).astype(jnp.bfloat16),
        (2, 2), ((3, 3), (3, 3)), dimension_numbers=("NHWC", "HWIO", "NHWC"),
        preferred_element_type=jnp.float32)
    ref1 = jnp.maximum(ref1 * bnscale, 0.0)
    got1 = x1_flat[:, :params["stem"]["cout"]].reshape(ref1.shape)
    assert jnp.allclose(ref1, got1, rtol=2e-2, atol=2e-2), "stem mismatch"

    # --- check 2: fused bottleneck block kernels vs XLA reference ------------
    test_blocks = [params["layers"][0][1],   # stride 1, no downsample
                   params["layers"][1][0]]   # stride 2, with downsample
    for blk in test_blocks:
        cin = blk["raw"]["w1"].shape[1]
        xb = jax.random.normal(ckey, (2, 8, 8, cin), jnp.float32)
        got = _run_block_padded(xb, blk)
        ref = _ref_bottleneck(xb, blk["raw"])
        assert jnp.allclose(ref, got, rtol=2e-2, atol=2e-2), "block mismatch"

    # --- full forward ---------------------------------------------------------
    fwd = jax.jit(lambda a: resnet50_unbottlenecked_forward(a, params,
                                                            is_unet=False))
    (x_5,) = fwd(x)
    x_5 = jax.block_until_ready(x_5)

    expected = (2, CHANNELS_ORDERING[-1], 2, 2)              # (N, 64, H/32, W/32)
    assert x_5.shape == expected, (x_5.shape, expected)
    assert bool(jnp.all(jnp.isfinite(x_5)))
    print("KERNEL_OK")
</pallas_src>

<mosaic_0001>
module attributes {stable_mosaic.version = 11 : i64} {
  func.func @_mm_bn_act_kernel(%arg0: i32, %arg1: memref<512x147xf32, #tpu.memory_space<vmem>>, %arg2: memref<147x128xbf16, #tpu.memory_space<vmem>>, %arg3: memref<1x128xf32, #tpu.memory_space<vmem>>, %arg4: memref<1x128xf32, #tpu.memory_space<vmem>>, %arg5: memref<512x128xf32, #tpu.memory_space<vmem>>) attributes {dimension_semantics = [#tpu.dimension_semantics<parallel>], iteration_bounds = array<i64: 4>, scalar_prefetch = 0 : i64, scratch_operands = 0 : i64, tpu.core_type = #tpu.core_type<tc>, window_params = [{transform_indices = @transform_0, window_bounds = array<i64: 512, 147>}, {pipeline_mode = #tpu.pipeline_mode<synchronous>, transform_indices = @transform_1, window_bounds = array<i64: 147, 128>}, {pipeline_mode = #tpu.pipeline_mode<synchronous>, transform_indices = @transform_2, window_bounds = array<i64: 1, 128>}, {pipeline_mode = #tpu.pipeline_mode<synchronous>, transform_indices = @transform_3, window_bounds = array<i64: 1, 128>}, {transform_indices = @transform_4, window_bounds = array<i64: 512, 128>}]} {
    %c0 = arith.constant 0 : index
    %c0_0 = arith.constant 0 : index
    %0 = vector.load %arg1[%c0, %c0_0] : memref<512x147xf32, #tpu.memory_space<vmem>>, vector<512x147xf32>
    %1 = arith.truncf %0 : vector<512x147xf32> to vector<512x147xbf16>
    %c0_1 = arith.constant 0 : index
    %c0_2 = arith.constant 0 : index
    %2 = vector.load %arg2[%c0_1, %c0_2] : memref<147x128xbf16, #tpu.memory_space<vmem>>, vector<147x128xbf16>
    %cst = arith.constant dense<0.000000e+00> : vector<512x128xf32>
    %3 = tpu.matmul %1, %2, %cst {dimension_numbers = #tpu.dot_dimension_numbers<[1], [0], [0], [1], [0, 0, 1, 1], [], []>} : vector<512x147xbf16>, vector<147x128xbf16>, vector<512x128xf32> -> vector<512x128xf32>
    %c0_3 = arith.constant 0 : index
    %c0_4 = arith.constant 0 : index
    %4 = vector.load %arg3[%c0_3, %c0_4] : memref<1x128xf32, #tpu.memory_space<vmem>>, vector<1x128xf32>
    %5 = vector.broadcast %4 : vector<1x128xf32> to vector<512x128xf32>
    %6 = arith.mulf %3, %5 : vector<512x128xf32>
    %c0_5 = arith.constant 0 : index
    %c0_6 = arith.constant 0 : index
    %7 = vector.load %arg4[%c0_5, %c0_6] : memref<1x128xf32, #tpu.memory_space<vmem>>, vector<1x128xf32>
    %8 = vector.broadcast %7 : vector<1x128xf32> to vector<512x128xf32>
    %9 = arith.addf %6, %8 : vector<512x128xf32>
    %cst_7 = arith.constant 0.000000e+00 : f32
    %10 = vector.broadcast %cst_7 : f32 to vector<512x128xf32>
    %11 = arith.maximumf %9, %10 : vector<512x128xf32>
    %c0_8 = arith.constant 0 : index
    %c0_9 = arith.constant 0 : index
    %12 = vector.load %arg5[%c0_8, %c0_9] : memref<512x128xf32, #tpu.memory_space<vmem>>, vector<512x128xf32>
    tpu.vector_store %arg5[%c0_8, %c0_9], %11 {strides = array<i32>} : memref<512x128xf32, #tpu.memory_space<vmem>>, vector<512x128xf32>,
    return
  }
  func.func @transform_0(%arg0: i32) -> (i32, i32) {
    %c0_i32 = arith.constant 0 : i32
    %c0_i32_0 = arith.constant 0 : i32
    return %arg0, %c0_i32 : i32, i32
  }
  func.func @transform_1(%arg0: i32) -> (i32, i32) {
    %c0_i32 = arith.constant 0 : i32
    %c0_i32_0 = arith.constant 0 : i32
    %c0_i32_1 = arith.constant 0 : i32
    return %c0_i32, %c0_i32_0 : i32, i32
  }
  func.func @transform_2(%arg0: i32) -> (i32, i32) {
    %c0_i32 = arith.constant 0 : i32
    %c0_i32_0 = arith.constant 0 : i32
    %c0_i32_1 = arith.constant 0 : i32
    return %c0_i32, %c0_i32_0 : i32, i32
  }
  func.func @transform_3(%arg0: i32) -> (i32, i32) {
    %c0_i32 = arith.constant 0 : i32
    %c0_i32_0 = arith.constant 0 : i32
    %c0_i32_1 = arith.constant 0 : i32
    return %c0_i32, %c0_i32_0 : i32, i32
  }
  func.func @transform_4(%arg0: i32) -> (i32, i32) {
    %c0_i32 = arith.constant 0 : i32
    %c0_i32_0 = arith.constant 0 : i32
    return %arg0, %c0_i32 : i32, i32
  }
}

</mosaic_0001>

<bundles_post_ra>
// kernel: tpu_custom_call.1
= control target key start
LH: loop header
LB: loop body
LE: loop exit
PB: predicated region body
PF: predicated region fallthrough
CT: control target
= control target key end

     0   :  { %9 = vsyncpa [#allocation3], 0  ;;  %s1956_s0 = inlined_call_operand.vmem [shape: f32[2048,147], index: 0, kind: input, shape index: {}]   ;;  %s1957_s1 = inlined_call_operand.vmem [shape: bf16[147,128], index: 1, kind: input, shape index: {}]   ;;  %s1958_s2 = inlined_call_operand.vmem [shape: f32[1,128], index: 2, kind: input, shape index: {}]   ;;  %s1959_s3 = inlined_call_operand.vmem [shape: f32[1,128], index: 3, kind: input, shape index: {}]   ;;  %s1960_s4 = inlined_call_operand.hbm [shape: f32[2048,128], index: 4, kind: output, shape index: {}]  }
   0x1   :  { %11 = vsyncpa [#allocation3 + $0x1], 0  ;;  %s1434_s15 = smov 0   ;;  %s1436_s16 = smov 0  }
   0x2   :  { %s1438_s17 = smov 0   ;;  %s1440_s18 = smov 0  }
   0x3 LB: > { %s1455_s19 = sadd.s32 4294967295, %s1402_s18   ;;  %s1210_s20 = sadd.s32 4294967294, %s1402_s18   ;;  %s1402_s18 = sphi %s1440_s18, %s1966_s18   ;;  %s1398_s17 = sphi %s1438_s17, %s1965_s17   ;;  %s1394_s16 = sphi %s1436_s16, %s1964_s16   ;;  %s1390_s15 = sphi %s1434_s15, %s1963_s15  }
   0x4   : > { %s1459_s21 = sadd.s32 1, %s1402_s18   ;;  %s113_s22 = sadd.s32 1, %s1398_s17 }
   0x5   : > { %s110_s23 = ssub.s32 %s1402_s18, %s1459_s21  ;;  %p123_p0 = scmp.ne.s32.totalorder %s1398_s17, %s1394_s16 }
   0x6   : > { %p111_p1 = scmp.eq.s32.totalorder %s110_s23, 0  ;;  %p124_p2 = scmp.eq.s32.totalorder %s1455_s19, 3 }
   0x7   : > { %p129_p3 = scmp.ne.s32.totalorder %s1394_s16, %s1390_s15  ;;  %p130_p4 = scmp.eq.s32.totalorder %s1210_s20, 3 }
   0x8   : > { %s1470_s24 = scalar_select %p111_p1, %s1398_s17, %s113_s22  }
   0x9   : > { %p1472_p5 = por %p124_p2, %p123_p0  ;;  %p1476_p6 = por %p130_p4, %p129_p3 }
   0xa   : > { %p1213_p7 = scmp.ge.s32.totalorder %s1402_s18, 1  ;;  %p167_p8 = scmp.lt.s32.totalorder %s1402_s18, 5 }
   0xc   : > { %p168_p9 = pnand %p1213_p7, %p167_p8 }
   0xd   : > { %s1215_s7 = sshll.u32 (!%p168_p9), %s1455_s19, 6  ;;  %s191_s9 = sand.u32 (!%p168_p9), 1, %s1394_s16  }
   0xe   : > { %171 = sbr.rel (%p168_p9) target bundleno = 397 (0x18d), region = 36  ;;  %p195_p10 = scmp.lt.s32.totalorder (!%p168_p9), %s1215_s7, 255 }
   0xf   : > { %s1214_s20 = sshll.u32 (!%p168_p9), %s191_s9, 9  ;;  %s1268_s22 = sshll.u32 (!%p168_p9), %s1455_s19, 13 }
  0x10   : > { %s1908_s29 = scalar_lea.hbm (!%p168_p9), %s1960_s4, %s1268_s22  ;;  %s1916_s19 = scalar_lea.sflag (!%p168_p9), [#allocation3], %s191_s9 }
  0x11   : > { %s1406_s5 = smov (!%p168_p9), [#allocation2]  }
  0x12   : > { %s1346_s6 = sshll.u32 (!%p168_p9), %s1406_s5, 4  ;;  %s1347_s6 = int_to_ptr.vmem [resolvable:$false] %s1346_s6 }
  0x13   : > { %v1332_v0 = vld [vmem:[%s1957_s1 + $0x38] sm:$0xff]   ;;  %v1404_v1 = vmov 0   ;;  %v1333_v2 = vld [vmem:[%s1957_s1 + $0x30] sm:$0xff]   ;;  %v1334_v3 = vld [vmem:[%s1957_s1 + $0x28] sm:$0xff]   ;;  %s1968_s7 = smov (!%p195_p10, %s1215_s7), 255  ;;  %vm471_vm0 = vcmask 154624  }
  0x14   : > { %575 = vmatprep.subr.bf16.mxu0 %v1404_v1  ;;  %1269 = vmatprep.subr.bf16.mxu1 %v1404_v1  ;;  %v1335_v4 = vld [vmem:[%s1957_s1 + $0x20] sm:$0xff]   ;;  %s1267_s10 = sshll.u32 %s1968_s7, 4  ;;  %v1336_v8 = vld [vmem:[%s1957_s1 + $0x18] sm:$0xff]   ;;  %v1337_v12 = vld [vmem:[%s1957_s1 + $0x10] sm:$0xff]   ;;  %vm568_vm1 = vcmask 1040384   ;;  %vm569_vm2 = vcmask 1041408  }
  0x15   : > { %576 = vmatpush1.bf16.msra.mxu0 %v1332_v0  ;;  %1279 = vmatpush1.bf16.msra.mxu1 %v1332_v0  ;;  %s1506_s13 = scalar_lea.vmem %s1956_s0, %s1267_s10  ;;  %v1338_v13 = vld [vmem:[%s1957_s1 + $0x8] sm:$0xff]   ;;  %v1405_v14 = vmov 65535   ;;  %v1339_v16 = vld [vmem:[%s1957_s1] sm:$0xff]   ;;  %s1348_s7 = scalar_lea.vmem %s1347_s6, 16384 }
  0x16   : > { %577 = vmatprep.subr.bf16.mxu0 %v1404_v1  ;;  %1270 = vmatprep.subr.bf16.mxu1 %v1404_v1  ;;  %v204_v5 = vld [vmem:[%s1506_s13 + $0x8] sm:$0xff]  ;;  %v206_v6 = vld [vmem:[%s1506_s13 + $0x18] sm:$0xff]  ;;  %v570_v15 = vsel %vm568_vm1, 4294967295, %v1405_v14  ;;  %v1341_v20 = vld [vmem:[%s1957_s1 + $0x40] sm:$0xff]  }
  0x17   : > { %v268_v7 = vld [vmem:[%s1506_s13 + $0x208] sm:$0xff]  ;;  %v332_v9 = vpack.c.bf16 %v206_v6, %v204_v5  ;;  %v270_v10 = vld [vmem:[%s1506_s13 + $0x218] sm:$0xff]  ;;  %v571_v18 = vsel %vm569_vm2, %v570_v15, 0  ;;  %v203_v21 = vld [vmem:[%s1506_s13] sm:$0xff] }
  0x18   : > { %v364_v11 = vpack.c.bf16 %v270_v10, %v268_v7  ;;  %v1340_v17 = vld [vmem:[%s1957_s1 + $0x48] ss:$0 sps:$4 sm:$0x33]   ;;  %v205_v22 = vld [vmem:[%s1506_s13 + $0x10] sm:$0xff]  ;;  %v267_v23 = vld [vmem:[%s1506_s13 + $0x200] sm:$0xff] }
  0x19   : > { %578 = vmatpush1.bf16.msra.mxu0 %v1333_v2  ;;  %1280 = vmatpush1.bf16.msra.mxu1 %v1333_v2  ;;  %v573_v19 = vand.u32 %v1340_v17, %v571_v18  ;;  %v269_v24 = vld [vmem:[%s1506_s13 + $0x210] sm:$0xff]  ;;  %v208_v25 = vld [vmem:[%s1506_s13 + $0x28] sm:$0xff]  ;;  %v210_v26 = vld [vmem:[%s1506_s13 + $0x38] sm:$0xff]  ;;  %v331_v29 = vpack.c.bf16 %v205_v22, %v203_v21 }
  0x1a   : > { %579 = vmatprep.subr.bf16.mxu0 %v1404_v1  ;;  %1271 = vmatprep.subr.bf16.mxu1 %v1404_v1  ;;  %v272_v27 = vld [vmem:[%s1506_s13 + $0x228] sm:$0xff]  ;;  %v274_v28 = vld [vmem:[%s1506_s13 + $0x238] sm:$0xff]  ;;  %v363_v30 = vpack.c.bf16 %v269_v24, %v267_v23  ;;  %v334_v31 = vpack.c.bf16 %v210_v26, %v208_v25  ;;  %v207_v33 = vld [vmem:[%s1506_s13 + $0x20] sm:$0xff] }
  0x1b   : > { %1228 = vmatprep.mubr.msk.bf16.mxu0 %vm471_vm0, %v332_v9  ;;  %1244 = vmatprep.mubr.msk.bf16.mxu1 %vm471_vm0, %v364_v11  ;;  %v366_v32 = vpack.c.bf16 %v274_v28, %v272_v27  ;;  %v209_v34 = vld [vmem:[%s1506_s13 + $0x30] sm:$0xff]  ;;  %v271_v35 = vld [vmem:[%s1506_s13 + $0x220] sm:$0xff]  ;;  %v212_v37 = vld [vmem:[%s1506_s13 + $0x48] sm:$0xff] }
  0x1c   : > { %v273_v36 = vld [vmem:[%s1506_s13 + $0x230] sm:$0xff]  ;;  %v214_v38 = vld [vmem:[%s1506_s13 + $0x58] sm:$0xff]  ;;  %v276_v39 = vld [vmem:[%s1506_s13 + $0x248] sm:$0xff]  ;;  %v333_v41 = vpack.c.bf16 %v209_v34, %v207_v33 }
  0x1d   : > { %580 = vmatpush1.bf16.msra.mxu0 %v1334_v3  ;;  %1281 = vmatpush1.bf16.msra.mxu1 %v1334_v3  ;;  %v278_v40 = vld [vmem:[%s1506_s13 + $0x258] sm:$0xff]  ;;  %v365_v42 = vpack.c.bf16 %v273_v36, %v271_v35  ;;  %v336_v43 = vpack.c.bf16 %v214_v38, %v212_v37  ;;  %v211_v45 = vld [vmem:[%s1506_s13 + $0x40] sm:$0xff]  ;;  %v213_v46 = vld [vmem:[%s1506_s13 + $0x50] sm:$0xff] }
  0x1e   : > { %581 = vmatprep.subr.bf16.mxu0 %v1404_v1  ;;  %1272 = vmatprep.subr.bf16.mxu1 %v1404_v1  ;;  %v368_v44 = vpack.c.bf16 %v278_v40, %v276_v39  ;;  %v275_v47 = vld [vmem:[%s1506_s13 + $0x240] sm:$0xff]  ;;  %v277_v48 = vld [vmem:[%s1506_s13 + $0x250] sm:$0xff]  ;;  %v216_v49 = vld [vmem:[%s1506_s13 + $0x68] sm:$0xff]  ;;  %v335_v53 = vpack.c.bf16 %v213_v46, %v211_v45 }
  0x1f   : > { %v218_v50 = vld [vmem:[%s1506_s13 + $0x78] sm:$0xff]  ;;  %v280_v51 = vld [vmem:[%s1506_s13 + $0x268] sm:$0xff]  ;;  %v367_v54 = vpack.c.bf16 %v277_v48, %v275_v47  ;;  %v215_v57 = vld [vmem:[%s1506_s13 + $0x60] sm:$0xff] }
  0x20   : > { %v282_v52 = vld [vmem:[%s1506_s13 + $0x278] sm:$0xff]  ;;  %v338_v55 = vpack.c.bf16 %v218_v50, %v216_v49  ;;  %v217_v58 = vld [vmem:[%s1506_s13 + $0x70] sm:$0xff]  ;;  %v279_v59 = vld [vmem:[%s1506_s13 + $0x260] sm:$0xff] }
  0x21   : > { %582 = vmatpush1.bf16.msra.mxu0 %v1335_v4  ;;  %1282 = vmatpush1.bf16.msra.mxu1 %v1335_v4  ;;  %v370_v56 = vpack.c.bf16 %v282_v52, %v280_v51  ;;  %v281_v60 = vld [vmem:[%s1506_s13 + $0x270] sm:$0xff]  ;;  %v220_v61 = vld [vmem:[%s1506_s13 + $0x88] sm:$0xff]  ;;  %v222_v62 = vld [vmem:[%s1506_s13 + $0x98] sm:$0xff] }
  0x22   : > { %583 = vmatprep.subr.bf16.mxu0 %v1404_v1  ;;  %1273 = vmatprep.subr.bf16.mxu1 %v1404_v1  ;;  %v284_v63 = vld [vmem:[%s1506_s13 + $0x288] sm:$0xff]  ;;  %v286_v0 = vld [vmem:[%s1506_s13 + $0x298] sm:$0xff]  ;;  %v369_v2 = vpack.c.bf16 %v281_v60, %v279_v59  ;;  %v340_v3 = vpack.c.bf16 %v222_v62, %v220_v61  ;;  %v219_v5 = vld [vmem:[%s1506_s13 + $0x80] sm:$0xff] }
  0x23   : > { %v372_v4 = vpack.c.bf16 %v286_v0, %v284_v63  ;;  %v221_v6 = vld [vmem:[%s1506_s13 + $0x90] sm:$0xff]  ;;  %v283_v7 = vld [vmem:[%s1506_s13 + $0x280] sm:$0xff]  ;;  %v224_v9 = vld [vmem:[%s1506_s13 + $0xa8] sm:$0xff] }
  0x24   : > { %v226_v10 = vld [vmem:[%s1506_s13 + $0xb8] sm:$0xff]  ;;  %v288_v11 = vld [vmem:[%s1506_s13 + $0x2a8] sm:$0xff]  ;;  %v223_v17 = vld [vmem:[%s1506_s13 + $0xa0] sm:$0xff] }
  0x25   : > { %584 = vmatpush1.bf16.msra.mxu0 %v1336_v8  ;;  %1283 = vmatpush1.bf16.msra.mxu1 %v1336_v8  ;;  %v285_v8 = vld [vmem:[%s1506_s13 + $0x290] sm:$0xff]  ;;  %v342_v15 = vpack.c.bf16 %v226_v10, %v224_v9  ;;  %v228_v21 = vld [vmem:[%s1506_s13 + $0xc8] sm:$0xff]  ;;  %v230_v22 = vld [vmem:[%s1506_s13 + $0xd8] sm:$0xff] }
  0x26   : > { %585 = vmatprep.subr.bf16.mxu0 %v1404_v1  ;;  %1274 = vmatprep.subr.bf16.mxu1 %v1404_v1  ;;  %v371_v14 = vpack.c.bf16 %v285_v8, %v283_v7  ;;  %v225_v18 = vld [vmem:[%s1506_s13 + $0xb0] sm:$0xff]  ;;  %v292_v23 = vld [vmem:[%s1506_s13 + $0x2c8] sm:$0xff]  ;;  %v294_v24 = vld [vmem:[%s1506_s13 + $0x2d8] sm:$0xff]  ;;  %v344_v27 = vpack.c.bf16 %v230_v22, %v228_v21 }
  0x27   : > { %v341_v25 = vpack.c.bf16 %v225_v18, %v223_v17  ;;  %v376_v28 = vpack.c.bf16 %v294_v24, %v292_v23  ;;  %v232_v33 = vld [vmem:[%s1506_s13 + $0xe8] sm:$0xff]  ;;  %v234_v34 = vld [vmem:[%s1506_s13 + $0xf8] sm:$0xff] }
  0x28   : > { %v296_v35 = vld [vmem:[%s1506_s13 + $0x2e8] sm:$0xff]  ;;  %v298_v36 = vld [vmem:[%s1506_s13 + $0x2f8] sm:$0xff]  ;;  %v346_v39 = vpack.c.bf16 %v234_v34, %v232_v33 }
  0x29   : > { %586 = vmatpush1.bf16.msra.mxu0 %v1337_v12  ;;  %1284 = vmatpush1.bf16.msra.mxu1 %v1337_v12  ;;  %v290_v12 = vld [vmem:[%s1506_s13 + $0x2b8] sm:$0xff]  ;;  %v378_v40 = vpack.c.bf16 %v298_v36, %v296_v35  ;;  %v236_v45 = vld [vmem:[%s1506_s13 + $0x108] sm:$0xff] }
  0x2a   : > { %587 = vmatprep.subr.bf16.mxu0 %v1404_v1  ;;  %1275 = vmatprep.subr.bf16.mxu1 %v1404_v1  ;;  %v238_v46 = vld [vmem:[%s1506_s13 + $0x118] sm:$0xff]  ;;  %v300_v47 = vld [vmem:[%s1506_s13 + $0x308] sm:$0xff] }
  0x2b   : > { %v302_v48 = vld [vmem:[%s1506_s13 + $0x318] sm:$0xff]  ;;  %v348_v51 = vpack.c.bf16 %v238_v46, %v236_v45  ;;  %v304_v59 = vld [vmem:[%s1506_s13 + $0x328] sm:$0xff] }
  0x2c   : > { %v380_v52 = vpack.c.bf16 %v302_v48, %v300_v47  ;;  %v306_v60 = vld [vmem:[%s1506_s13 + $0x338] sm:$0xff]  ;;  %v308_v7 = vld [vmem:[%s1506_s13 + $0x348] sm:$0xff] }
  0x2d   : > { %588 = vmatpush1.bf16.msra.mxu0 %v1338_v13  ;;  %1285 = vmatpush1.bf16.msra.mxu1 %v1338_v13  ;;  %v339_v13 = vpack.c.bf16 %v221_v6, %v219_v5  ;;  %v382_v0 = vpack.c.bf16 %v306_v60, %v304_v59  ;;  %v244_v5 = vld [vmem:[%s1506_s13 + $0x148] sm:$0xff]  ;;  %v246_v6 = vld [vmem:[%s1506_s13 + $0x158] sm:$0xff] }
  0x2e   : > { %589 = vmatprep.subr.bf16.mxu0 %v1404_v1  ;;  %1276 = vmatprep.subr.bf16.mxu1 %v1404_v1  ;;  %v310_v8 = vld [vmem:[%s1506_s13 + $0x358] sm:$0xff]  ;;  %v248_v17 = vld [vmem:[%s1506_s13 + $0x168] sm:$0xff] }
  0x2f   : > { %v250_v18 = vld [vmem:[%s1506_s13 + $0x178] sm:$0xff] }
  0x30   : > { %v354_v23 = vpack.c.bf16 %v250_v18, %v248_v17  ;;  %v1707_v17 = vld [vmem:[%s1959_s3] ss:$0 sm:$0xff] }
  0x31   : > { %590 = vmatpush1.bf16.msra.mxu0 %v1339_v16  ;;  %1286 = vmatpush1.bf16.msra.mxu1 %v1339_v16  ;;  %v374_v16 = vpack.c.bf16 %v290_v12, %v288_v11  ;;  %v352_v11 = vpack.c.bf16 %v246_v6, %v244_v5  ;;  %v384_v12 = vpack.c.bf16 %v310_v8, %v308_v7 }
  0x32   : > { %603 = vmatprep.subr.bf16.mxu0 %v1404_v1  ;;  %1277 = vmatprep.subr.bf16.mxu1 %v1404_v1 }
  0x35   : > { %604 = vmatpush2.bf16.msra.mxu0 %v573_v19  ;;  %1287 = vmatpush2.bf16.msra.mxu1 %v573_v19  ;;  %v287_v19 = vld [vmem:[%s1506_s13 + $0x2a0] sm:$0xff] }
  0x36   : > { %605 = vmatprep.subr.bf16.mxu0 %v1404_v1  ;;  %1278 = vmatprep.subr.bf16.mxu1 %v1404_v1  ;;  %v337_v1 = vpack.c.bf16 %v217_v58, %v215_v57  ;;  %v240_v57 = vld [vmem:[%s1506_s13 + $0x128] sm:$0xff]  ;;  %v242_v58 = vld [vmem:[%s1506_s13 + $0x138] sm:$0xff] }
  0x37   : > { %v350_v63 = vpack.c.bf16 %v242_v58, %v240_v57 }
  0x39   : > { %606 = vmatpush2.bf16.msra.mxu0 %v1341_v20  ;;  %1288 = vmatpush2.bf16.msra.mxu1 %v1341_v20  ;;  %v289_v20 = vld [vmem:[%s1506_s13 + $0x2b0] sm:$0xff] }
  0x3a   : > { %v373_v26 = vpack.c.bf16 %v289_v20, %v287_v19  ;;  %v312_v19 = vld [vmem:[%s1506_s13 + $0x368] sm:$0xff]  ;;  %v314_v20 = vld [vmem:[%s1506_s13 + $0x378] sm:$0xff] }
  0x3b   : > { %v386_v24 = vpack.c.bf16 %v314_v20, %v312_v19 }
  0x3c   : > { %608 = vmatmul.mubr.bf16.vlgmr.msra.gmra.mxu0 %v331_v29  ;;  %736 = vmatmul.mubr.bf16.vlgmr.msra.gmra.mxu1 %v363_v30  ;;  %v227_v29 = vld [vmem:[%s1506_s13 + $0xc0] sm:$0xff]  ;;  %v229_v30 = vld [vmem:[%s1506_s13 + $0xd0] sm:$0xff] }
  0x3d   : > { %1229 = vmatprep.mubr.msk.bf16.mxu0 %vm471_vm0, %v334_v31  ;;  %1245 = vmatprep.mubr.msk.bf16.mxu1 %vm471_vm0, %v366_v32  ;;  %v291_v31 = vld [vmem:[%s1506_s13 + $0x2c0] sm:$0xff]  ;;  %v293_v32 = vld [vmem:[%s1506_s13 + $0x2d0] sm:$0xff]  ;;  %v343_v37 = vpack.c.bf16 %v229_v30, %v227_v29  ;;  %v252_v29 = vld [vmem:[%s1506_s13 + $0x188] sm:$0xff] }
  0x3e   : > { %v375_v38 = vpack.c.bf16 %v293_v32, %v291_v31  ;;  %v254_v30 = vld [vmem:[%s1506_s13 + $0x198] sm:$0xff]  ;;  %v316_v31 = vld [vmem:[%s1506_s13 + $0x388] sm:$0xff] }
  0x3f   : > { %v318_v32 = vld [vmem:[%s1506_s13 + $0x398] sm:$0xff]  ;;  %v356_v35 = vpack.c.bf16 %v254_v30, %v252_v29 }
  0x40   : > { %v388_v36 = vpack.c.bf16 %v318_v32, %v316_v31 }
  0x44   : > { %616 = vmatmul.mubr.bf16.gmra.mxu0 %v333_v41  ;;  %744 = vmatmul.mubr.bf16.gmra.mxu1 %v365_v42  ;;  %v231_v41 = vld [vmem:[%s1506_s13 + $0xe0] sm:$0xff]  ;;  %v233_v42 = vld [vmem:[%s1506_s13 + $0xf0] sm:$0xff] }
  0x45   : > { %1230 = vmatprep.mubr.msk.bf16.mxu0 %vm471_vm0, %v336_v43  ;;  %1246 = vmatprep.mubr.msk.bf16.mxu1 %vm471_vm0, %v368_v44  ;;  %v295_v43 = vld [vmem:[%s1506_s13 + $0x2e0] sm:$0xff]  ;;  %v297_v44 = vld [vmem:[%s1506_s13 + $0x2f0] sm:$0xff]  ;;  %v345_v49 = vpack.c.bf16 %v233_v42, %v231_v41  ;;  %v256_v41 = vld [vmem:[%s1506_s13 + $0x1a8] sm:$0xff] }
  0x46   : > { %v377_v50 = vpack.c.bf16 %v297_v44, %v295_v43  ;;  %v258_v42 = vld [vmem:[%s1506_s13 + $0x1b8] sm:$0xff]  ;;  %v320_v43 = vld [vmem:[%s1506_s13 + $0x3a8] sm:$0xff] }
  0x47   : > { %v322_v44 = vld [vmem:[%s1506_s13 + $0x3b8] sm:$0xff]  ;;  %v358_v47 = vpack.c.bf16 %v258_v42, %v256_v41 }
  0x48   : > { %v390_v48 = vpack.c.bf16 %v322_v44, %v320_v43 }
  0x4c   : > { %624 = vmatmul.mubr.bf16.gmra.mxu0 %v335_v53  ;;  %752 = vmatmul.mubr.bf16.gmra.mxu1 %v367_v54  ;;  %v235_v53 = vld [vmem:[%s1506_s13 + $0x100] sm:$0xff]  ;;  %v237_v54 = vld [vmem:[%s1506_s13 + $0x110] sm:$0xff] }
  0x4d   : > { %1231 = vmatprep.mubr.msk.bf16.mxu0 %vm471_vm0, %v338_v55  ;;  %1247 = vmatprep.mubr.msk.bf16.mxu1 %vm471_vm0, %v370_v56  ;;  %v299_v55 = vld [vmem:[%s1506_s13 + $0x300] sm:$0xff]  ;;  %v301_v56 = vld [vmem:[%s1506_s13 + $0x310] sm:$0xff]  ;;  %v347_v61 = vpack.c.bf16 %v237_v54, %v235_v53  ;;  %v260_v53 = vld [vmem:[%s1506_s13 + $0x1c8] sm:$0xff] }
  0x4e   : > { %v379_v62 = vpack.c.bf16 %v301_v56, %v299_v55  ;;  %v262_v54 = vld [vmem:[%s1506_s13 + $0x1d8] sm:$0xff]  ;;  %v324_v55 = vld [vmem:[%s1506_s13 + $0x3c8] sm:$0xff] }
  0x4f   : > { %v326_v56 = vld [vmem:[%s1506_s13 + $0x3d8] sm:$0xff]  ;;  %v360_v59 = vpack.c.bf16 %v262_v54, %v260_v53 }
  0x50   : > { %v392_v60 = vpack.c.bf16 %v326_v56, %v324_v55 }
  0x54   : > { %632 = vmatmul.mubr.bf16.gmra.mxu0 %v337_v1  ;;  %760 = vmatmul.mubr.bf16.gmra.mxu1 %v369_v2  ;;  %v239_v1 = vld [vmem:[%s1506_s13 + $0x120] sm:$0xff]  ;;  %v241_v2 = vld [vmem:[%s1506_s13 + $0x130] sm:$0xff] }
  0x55   : > { %1232 = vmatprep.mubr.msk.bf16.mxu0 %vm471_vm0, %v340_v3  ;;  %1248 = vmatprep.mubr.msk.bf16.mxu1 %vm471_vm0, %v372_v4  ;;  %v303_v3 = vld [vmem:[%s1506_s13 + $0x320] sm:$0xff]  ;;  %v305_v4 = vld [vmem:[%s1506_s13 + $0x330] sm:$0xff]  ;;  %v349_v9 = vpack.c.bf16 %v241_v2, %v239_v1  ;;  %v264_v1 = vld [vmem:[%s1506_s13 + $0x1e8] sm:$0xff] }
  0x56   : > { %v381_v10 = vpack.c.bf16 %v305_v4, %v303_v3  ;;  %v266_v2 = vld [vmem:[%s1506_s13 + $0x1f8] sm:$0xff]  ;;  %v328_v3 = vld [vmem:[%s1506_s13 + $0x3e8] sm:$0xff] }
  0x57   : > { %v330_v4 = vld [vmem:[%s1506_s13 + $0x3f8] sm:$0xff]  ;;  %v362_v7 = vpack.c.bf16 %v266_v2, %v264_v1 }
  0x58   : > { %v394_v8 = vpack.c.bf16 %v330_v4, %v328_v3 }
  0x5c   : > { %640 = vmatmul.mubr.bf16.gmra.mxu0 %v339_v13  ;;  %768 = vmatmul.mubr.bf16.gmra.mxu1 %v371_v14  ;;  %v243_v13 = vld [vmem:[%s1506_s13 + $0x140] sm:$0xff]  ;;  %v245_v14 = vld [vmem:[%s1506_s13 + $0x150] sm:$0xff] }
  0x5d   : > { %1233 = vmatprep.mubr.msk.bf16.mxu0 %vm471_vm0, %v342_v15  ;;  %1249 = vmatprep.mubr.msk.bf16.mxu1 %vm471_vm0, %v374_v16  ;;  %v307_v15 = vld [vmem:[%s1506_s13 + $0x340] sm:$0xff]  ;;  %v309_v16 = vld [vmem:[%s1506_s13 + $0x350] sm:$0xff]  ;;  %v351_v21 = vpack.c.bf16 %v245_v14, %v243_v13 }
  0x5e   : > { %v383_v22 = vpack.c.bf16 %v309_v16, %v307_v15  ;;  %v1702_v15 = vld [vmem:[%s1958_s2] ss:$0 sm:$0xff] }
  0x64   : > { %648 = vmatmul.mubr.bf16.gmra.mxu0 %v341_v25  ;;  %776 = vmatmul.mubr.bf16.gmra.mxu1 %v373_v26  ;;  %v247_v25 = vld [vmem:[%s1506_s13 + $0x160] sm:$0xff]  ;;  %v249_v26 = vld [vmem:[%s1506_s13 + $0x170] sm:$0xff] }
  0x65   : > { %1234 = vmatprep.mubr.msk.bf16.mxu0 %vm471_vm0, %v344_v27  ;;  %1250 = vmatprep.mubr.msk.bf16.mxu1 %vm471_vm0, %v376_v28  ;;  %v311_v27 = vld [vmem:[%s1506_s13 + $0x360] sm:$0xff]  ;;  %v313_v28 = vld [vmem:[%s1506_s13 + $0x370] sm:$0xff]  ;;  %v353_v33 = vpack.c.bf16 %v249_v26, %v247_v25 }
  0x66   : > { %v385_v34 = vpack.c.bf16 %v313_v28, %v311_v27 }
  0x6c   : > { %656 = vmatmul.mubr.bf16.gmra.mxu0 %v343_v37  ;;  %784 = vmatmul.mubr.bf16.gmra.mxu1 %v375_v38  ;;  %v251_v37 = vld [vmem:[%s1506_s13 + $0x180] sm:$0xff]  ;;  %v253_v38 = vld [vmem:[%s1506_s13 + $0x190] sm:$0xff] }
  0x6d   : > { %1235 = vmatprep.mubr.msk.bf16.mxu0 %vm471_vm0, %v346_v39  ;;  %1251 = vmatprep.mubr.msk.bf16.mxu1 %vm471_vm0, %v378_v40  ;;  %v315_v39 = vld [vmem:[%s1506_s13 + $0x380] sm:$0xff]  ;;  %v317_v40 = vld [vmem:[%s1506_s13 + $0x390] sm:$0xff]  ;;  %v355_v45 = vpack.c.bf16 %v253_v38, %v251_v37 }
  0x6e   : > { %v387_v46 = vpack.c.bf16 %v317_v40, %v315_v39 }
  0x74   : > { %664 = vmatmul.mubr.bf16.gmra.mxu0 %v345_v49  ;;  %792 = vmatmul.mubr.bf16.gmra.mxu1 %v377_v50  ;;  %v255_v49 = vld [vmem:[%s1506_s13 + $0x1a0] sm:$0xff]  ;;  %v257_v50 = vld [vmem:[%s1506_s13 + $0x1b0] sm:$0xff] }
  0x75   : > { %1236 = vmatprep.mubr.msk.bf16.mxu0 %vm471_vm0, %v348_v51  ;;  %1252 = vmatprep.mubr.msk.bf16.mxu1 %vm471_vm0, %v380_v52  ;;  %v319_v51 = vld [vmem:[%s1506_s13 + $0x3a0] sm:$0xff]  ;;  %v321_v52 = vld [vmem:[%s1506_s13 + $0x3b0] sm:$0xff]  ;;  %v357_v57 = vpack.c.bf16 %v257_v50, %v255_v49 }
  0x76   : > { %v389_v58 = vpack.c.bf16 %v321_v52, %v319_v51 }
  0x7c   : > { %672 = vmatmul.mubr.bf16.gmra.mxu0 %v347_v61  ;;  %800 = vmatmul.mubr.bf16.gmra.mxu1 %v379_v62  ;;  %v259_v61 = vld [vmem:[%s1506_s13 + $0x1c0] sm:$0xff]  ;;  %v261_v62 = vld [vmem:[%s1506_s13 + $0x1d0] sm:$0xff] }
  0x7d   : > { %1237 = vmatprep.mubr.msk.bf16.mxu0 %vm471_vm0, %v350_v63  ;;  %1253 = vmatprep.mubr.msk.bf16.mxu1 %vm471_vm0, %v382_v0  ;;  %v323_v63 = vld [vmem:[%s1506_s13 + $0x3c0] sm:$0xff]  ;;  %v325_v0 = vld [vmem:[%s1506_s13 + $0x3d0] sm:$0xff]  ;;  %v359_v5 = vpack.c.bf16 %v261_v62, %v259_v61 }
  0x7e   : > { %v391_v6 = vpack.c.bf16 %v325_v0, %v323_v63 }
  0x84   : > { %680 = vmatmul.mubr.bf16.gmra.mxu0 %v349_v9  ;;  %808 = vmatmul.mubr.bf16.gmra.mxu1 %v381_v10  ;;  %v263_v9 = vld [vmem:[%s1506_s13 + $0x1e0] sm:$0xff]  ;;  %v265_v10 = vld [vmem:[%s1506_s13 + $0x1f0] sm:$0xff] }
  0x85   : > { %1238 = vmatprep.mubr.msk.bf16.mxu0 %vm471_vm0, %v352_v11  ;;  %1254 = vmatprep.mubr.msk.bf16.mxu1 %vm471_vm0, %v384_v12  ;;  %v327_v11 = vld [vmem:[%s1506_s13 + $0x3e0] sm:$0xff]  ;;  %v329_v12 = vld [vmem:[%s1506_s13 + $0x3f0] sm:$0xff]  ;;  %v361_v13 = vpack.c.bf16 %v265_v10, %v263_v9  ;;  %s1717_s13 = scalar_lea.vmem [#allocation2], %s1214_s20 }
  0x86   : > { %v393_v14 = vpack.c.bf16 %v329_v12, %v327_v11  ;;  %s1148_s23 = sshll.u32 %s1717_s13, 4  ;;  %s1910_s23 = int_to_ptr.vmem [resolvable:$true] %s1148_s23 }
  0x87   : > { %s1342_s30 = scalar_lea.vmem %s1910_s23, 8192  ;;  %p1349_p0 = scmp.lt.s32.totalorder %s1910_s23, %s1347_s6 }
  0x88   : > { %p1343_p11 = scmp.ne.s32.totalorder %s1910_s23, %s1342_s30  ;;  %p1350_p1 = scmp.lt.s32.totalorder %s1348_s7, %s1342_s30 }
  0x8a   : > { %p1344_p12 = pnand %p1343_p11, %p1472_p5  ;;  %p1351_p2 = por %p1350_p1, %p1349_p0 }
  0x8c   : > { %688 = vmatmul.mubr.bf16.gmra.mxu0 %v351_v21  ;;  %816 = vmatmul.mubr.bf16.gmra.mxu1 %v383_v22  ;;  %p1345_p13 = pneg %p1344_p12 }
  0x8d   : > { %1239 = vmatprep.mubr.msk.bf16.mxu0 %vm471_vm0, %v354_v23  ;;  %1255 = vmatprep.mubr.msk.bf16.mxu1 %vm471_vm0, %v386_v24 }
  0x8e   : > { %p1352_p3 = pnand %p1351_p2, %p1345_p13 }
  0x94   : > { %696 = vmatmul.mubr.bf16.gmra.mxu0 %v353_v33  ;;  %824 = vmatmul.mubr.bf16.gmra.mxu1 %v385_v34 }
  0x95   : > { %1240 = vmatprep.mubr.msk.bf16.mxu0 %vm471_vm0, %v356_v35  ;;  %1256 = vmatprep.mubr.msk.bf16.mxu1 %vm471_vm0, %v388_v36 }
  0x9c   : > { %704 = vmatmul.mubr.bf16.gmra.mxu0 %v355_v45  ;;  %832 = vmatmul.mubr.bf16.gmra.mxu1 %v387_v46 }
  0x9d   : > { %1241 = vmatprep.mubr.msk.bf16.mxu0 %vm471_vm0, %v358_v47  ;;  %1257 = vmatprep.mubr.msk.bf16.mxu1 %vm471_vm0, %v390_v48 }
  0xa4   : > { %712 = vmatmul.mubr.bf16.gmra.mxu0 %v357_v57  ;;  %840 = vmatmul.mubr.bf16.gmra.mxu1 %v389_v58 }
  0xa5   : > { %1242 = vmatprep.mubr.msk.bf16.mxu0 %vm471_vm0, %v360_v59  ;;  %1258 = vmatprep.mubr.msk.bf16.mxu1 %vm471_vm0, %v392_v60 }
  0xac   : > { %720 = vmatmul.mubr.bf16.gmra.mxu0 %v359_v5  ;;  %848 = vmatmul.mubr.bf16.gmra.mxu1 %v391_v6 }
  0xad   : > { %1243 = vmatprep.mubr.msk.bf16.mxu0 %vm471_vm0, %v362_v7  ;;  %1259 = vmatprep.mubr.msk.bf16.mxu1 %vm471_vm0, %v394_v8 }
  0xb4   : > { %728 = vmatmul.mubr.bf16.gmra.mxu0 %v361_v13  ;;  %856 = vmatmul.mubr.bf16.gmra.mxu1 %v393_v14 }
  0xfc   : > { %v609_v16 = vpop.f32.mrf.mxu0  ;;  %v737_v18 = vpop.f32.mrf.mxu1 }
  0xfd   : > { %v871_v19 = vmul.f32 %v1702_v15, %v609_v16  ;;  %v903_v20 = vmul.f32 %v1702_v15, %v737_v18 }
  0xfe   : > { %v611_v21 = vpop.f32.mrf.mxu0  ;;  %v739_v22 = vpop.f32.mrf.mxu1 }
  0xff   : > { %v942_v23 = vadd.f32 %v1707_v17, %v871_v19  ;;  %v974_v24 = vadd.f32 %v1707_v17, %v903_v20 }
 0x100   : > { %v612_v25 = vpop.f32.mrf.mxu0  ;;  %v740_v26 = vpop.f32.mrf.mxu1 }
 0x101   : > { %v1006_v27 = vmax.f32 %v942_v23, 0.0  ;;  %v1038_v28 = vmax.f32 %v974_v24, 0.0  ;;  %v872_v29 = vmul.f32 %v1702_v15, %v612_v25  ;;  %v904_v30 = vmul.f32 %v1702_v15, %v740_v26 }
 0x102   : > { %v614_v31 = vpop.f32.mrf.mxu0  ;;  %v742_v32 = vpop.f32.mrf.mxu1 }
 0x103   : > { %1070 = vst [vmem:[%s1717_s13] sm:$0xff] %v1006_v27  ;;  %1102 = vst [vmem:[%s1717_s13 + $0x100] sm:$0xff] %v1038_v28  ;;  %v943_v33 = vadd.f32 %v1707_v17, %v872_v29  ;;  %v975_v34 = vadd.f32 %v1707_v17, %v904_v30 }
 0x104   : > { %v617_v35 = vpop.f32.mrf.mxu0  ;;  %v745_v36 = vpop.f32.mrf.mxu1 }
 0x105   : > { %v1007_v37 = vmax.f32 %v943_v33, 0.0  ;;  %v1039_v38 = vmax.f32 %v975_v34, 0.0  ;;  %v873_v39 = vmul.f32 %v1702_v15, %v617_v35  ;;  %v905_v40 = vmul.f32 %v1702_v15, %v745_v36 }
 0x106   : > { %v619_v41 = vpop.f32.mrf.mxu0  ;;  %v747_v42 = vpop.f32.mrf.mxu1 }
 0x107   : > { %1071 = vst [vmem:[%s1717_s13 + $0x8] sm:$0xff] %v1007_v37  ;;  %1103 = vst [vmem:[%s1717_s13 + $0x108] sm:$0xff] %v1039_v38  ;;  %v944_v43 = vadd.f32 %v1707_v17, %v873_v39  ;;  %v976_v44 = vadd.f32 %v1707_v17, %v905_v40 }
 0x108   : > { %v620_v45 = vpop.f32.mrf.mxu0  ;;  %v748_v46 = vpop.f32.mrf.mxu1 }
 0x109   : > { %v1008_v47 = vmax.f32 %v944_v43, 0.0  ;;  %v1040_v48 = vmax.f32 %v976_v44, 0.0  ;;  %v874_v49 = vmul.f32 %v1702_v15, %v620_v45  ;;  %v906_v50 = vmul.f32 %v1702_v15, %v748_v46 }
 0x10a   : > { %v622_v51 = vpop.f32.mrf.mxu0  ;;  %v750_v52 = vpop.f32.mrf.mxu1 }
 0x10b   : > { %1072 = vst [vmem:[%s1717_s13 + $0x10] sm:$0xff] %v1008_v47  ;;  %1104 = vst [vmem:[%s1717_s13 + $0x110] sm:$0xff] %v1040_v48  ;;  %v945_v53 = vadd.f32 %v1707_v17, %v874_v49  ;;  %v977_v54 = vadd.f32 %v1707_v17, %v906_v50 }
 0x10c   : > { %v625_v55 = vpop.f32.mrf.mxu0  ;;  %v753_v56 = vpop.f32.mrf.mxu1 }
 0x10d   : > { %v1009_v57 = vmax.f32 %v945_v53, 0.0  ;;  %v1041_v58 = vmax.f32 %v977_v54, 0.0  ;;  %v875_v59 = vmul.f32 %v1702_v15, %v625_v55  ;;  %v907_v60 = vmul.f32 %v1702_v15, %v753_v56 }
 0x10e   : > { %v627_v61 = vpop.f32.mrf.mxu0  ;;  %v755_v62 = vpop.f32.mrf.mxu1 }
 0x10f   : > { %1073 = vst [vmem:[%s1717_s13 + $0x18] sm:$0xff] %v1009_v57  ;;  %1105 = vst [vmem:[%s1717_s13 + $0x118] sm:$0xff] %v1041_v58  ;;  %v946_v63 = vadd.f32 %v1707_v17, %v875_v59  ;;  %v978_v0 = vadd.f32 %v1707_v17, %v907_v60 }
 0x110   : > { %v628_v1 = vpop.f32.mrf.mxu0  ;;  %v756_v2 = vpop.f32.mrf.mxu1 }
 0x111   : > { %v1010_v3 = vmax.f32 %v946_v63, 0.0  ;;  %v1042_v4 = vmax.f32 %v978_v0, 0.0  ;;  %v876_v5 = vmul.f32 %v1702_v15, %v628_v1  ;;  %v908_v6 = vmul.f32 %v1702_v15, %v756_v2 }
 0x112   : > { %v630_v7 = vpop.f32.mrf.mxu0  ;;  %v758_v8 = vpop.f32.mrf.mxu1 }
 0x113   : > { %1074 = vst [vmem:[%s1717_s13 + $0x20] sm:$0xff] %v1010_v3  ;;  %1106 = vst [vmem:[%s1717_s13 + $0x120] sm:$0xff] %v1042_v4  ;;  %v947_v9 = vadd.f32 %v1707_v17, %v876_v5  ;;  %v979_v10 = vadd.f32 %v1707_v17, %v908_v6 }
 0x114   : > { %v633_v11 = vpop.f32.mrf.mxu0  ;;  %v761_v12 = vpop.f32.mrf.mxu1 }
 0x115   : > { %v1011_v13 = vmax.f32 %v947_v9, 0.0  ;;  %v1043_v14 = vmax.f32 %v979_v10, 0.0  ;;  %v877_v16 = vmul.f32 %v1702_v15, %v633_v11  ;;  %v909_v18 = vmul.f32 %v1702_v15, %v761_v12 }
 0x116   : > { %v635_v19 = vpop.f32.mrf.mxu0  ;;  %v763_v20 = vpop.f32.mrf.mxu1 }
 0x117   : > { %1075 = vst [vmem:[%s1717_s13 + $0x28] sm:$0xff] %v1011_v13  ;;  %1107 = vst [vmem:[%s1717_s13 + $0x128] sm:$0xff] %v1043_v14  ;;  %v948_v21 = vadd.f32 %v1707_v17, %v877_v16  ;;  %v980_v22 = vadd.f32 %v1707_v17, %v909_v18 }
 0x118   : > { %v636_v23 = vpop.f32.mrf.mxu0  ;;  %v764_v24 = vpop.f32.mrf.mxu1 }
 0x119   : > { %v1012_v25 = vmax.f32 %v948_v21, 0.0  ;;  %v1044_v26 = vmax.f32 %v980_v22, 0.0  ;;  %v878_v27 = vmul.f32 %v1702_v15, %v636_v23  ;;  %v910_v28 = vmul.f32 %v1702_v15, %v764_v24 }
 0x11a   : > { %v638_v29 = vpop.f32.mrf.mxu0  ;;  %v766_v30 = vpop.f32.mrf.mxu1 }
 0x11b   : > { %1076 = vst [vmem:[%s1717_s13 + $0x30] sm:$0xff] %v1012_v25  ;;  %1108 = vst [vmem:[%s1717_s13 + $0x130] sm:$0xff] %v1044_v26  ;;  %v949_v31 = vadd.f32 %v1707_v17, %v878_v27  ;;  %v981_v32 = vadd.f32 %v1707_v17, %v910_v28 }
 0x11c   : > { %v641_v33 = vpop.f32.mrf.mxu0  ;;  %v769_v34 = vpop.f32.mrf.mxu1 }
 0x11d   : > { %v1013_v35 = vmax.f32 %v949_v31, 0.0  ;;  %v1045_v36 = vmax.f32 %v981_v32, 0.0  ;;  %v879_v37 = vmul.f32 %v1702_v15, %v641_v33  ;;  %v911_v38 = vmul.f32 %v1702_v15, %v769_v34 }
 0x11e   : > { %v643_v39 = vpop.f32.mrf.mxu0  ;;  %v771_v40 = vpop.f32.mrf.mxu1 }
 0x11f   : > { %1077 = vst [vmem:[%s1717_s13 + $0x38] sm:$0xff] %v1013_v35  ;;  %1109 = vst [vmem:[%s1717_s13 + $0x138] sm:$0xff] %v1045_v36  ;;  %v950_v41 = vadd.f32 %v1707_v17, %v879_v37  ;;  %v982_v42 = vadd.f32 %v1707_v17, %v911_v38 }
 0x120   : > { %v644_v43 = vpop.f32.mrf.mxu0  ;;  %v772_v44 = vpop.f32.mrf.mxu1 }
 0x121   : > { %v1014_v45 = vmax.f32 %v950_v41, 0.0  ;;  %v1046_v46 = vmax.f32 %v982_v42, 0.0  ;;  %v880_v47 = vmul.f32 %v1702_v15, %v644_v43  ;;  %v912_v48 = vmul.f32 %v1702_v15, %v772_v44 }
 0x122   : > { %v646_v49 = vpop.f32.mrf.mxu0  ;;  %v774_v50 = vpop.f32.mrf.mxu1 }
 0x123   : > { %1078 = vst [vmem:[%s1717_s13 + $0x40] sm:$0xff] %v1014_v45  ;;  %1110 = vst [vmem:[%s1717_s13 + $0x140] sm:$0xff] %v1046_v46  ;;  %v951_v51 = vadd.f32 %v1707_v17, %v880_v47  ;;  %v983_v52 = vadd.f32 %v1707_v17, %v912_v48 }
 0x124   : > { %v649_v53 = vpop.f32.mrf.mxu0  ;;  %v777_v54 = vpop.f32.mrf.mxu1 }
 0x125   : > { %v1015_v55 = vmax.f32 %v951_v51, 0.0  ;;  %v1047_v56 = vmax.f32 %v983_v52, 0.0  ;;  %v881_v57 = vmul.f32 %v1702_v15, %v649_v53  ;;  %v913_v58 = vmul.f32 %v1702_v15, %v777_v54 }
 0x126   : > { %v651_v59 = vpop.f32.mrf.mxu0  ;;  %v779_v60 = vpop.f32.mrf.mxu1 }
 0x127   : > { %1079 = vst [vmem:[%s1717_s13 + $0x48] sm:$0xff] %v1015_v55  ;;  %1111 = vst [vmem:[%s1717_s13 + $0x148] sm:$0xff] %v1047_v56  ;;  %v952_v61 = vadd.f32 %v1707_v17, %v881_v57  ;;  %v984_v62 = vadd.f32 %v1707_v17, %v913_v58 }
 0x128   : > { %v652_v63 = vpop.f32.mrf.mxu0  ;;  %v780_v0 = vpop.f32.mrf.mxu1 }
 0x129   : > { %v1016_v1 = vmax.f32 %v952_v61, 0.0  ;;  %v1048_v2 = vmax.f32 %v984_v62, 0.0  ;;  %v882_v3 = vmul.f32 %v1702_v15, %v652_v63  ;;  %v914_v4 = vmul.f32 %v1702_v15, %v780_v0 }
 0x12a   : > { %v654_v5 = vpop.f32.mrf.mxu0  ;;  %v782_v6 = vpop.f32.mrf.mxu1 }
 0x12b   : > { %1080 = vst [vmem:[%s1717_s13 + $0x50] sm:$0xff] %v1016_v1  ;;  %1112 = vst [vmem:[%s1717_s13 + $0x150] sm:$0xff] %v1048_v2  ;;  %v953_v7 = vadd.f32 %v1707_v17, %v882_v3  ;;  %v985_v8 = vadd.f32 %v1707_v17, %v914_v4 }
 0x12c   : > { %v657_v9 = vpop.f32.mrf.mxu0  ;;  %v785_v10 = vpop.f32.mrf.mxu1 }
 0x12d   : > { %v1017_v11 = vmax.f32 %v953_v7, 0.0  ;;  %v1049_v12 = vmax.f32 %v985_v8, 0.0  ;;  %v883_v13 = vmul.f32 %v1702_v15, %v657_v9  ;;  %v915_v14 = vmul.f32 %v1702_v15, %v785_v10 }
 0x12e   : > { %v659_v16 = vpop.f32.mrf.mxu0  ;;  %v787_v18 = vpop.f32.mrf.mxu1 }
 0x12f   : > { %1081 = vst [vmem:[%s1717_s13 + $0x58] sm:$0xff] %v1017_v11  ;;  %1113 = vst [vmem:[%s1717_s13 + $0x158] sm:$0xff] %v1049_v12  ;;  %v954_v19 = vadd.f32 %v1707_v17, %v883_v13  ;;  %v986_v20 = vadd.f32 %v1707_v17, %v915_v14 }
 0x130   : > { %v660_v21 = vpop.f32.mrf.mxu0  ;;  %v788_v22 = vpop.f32.mrf.mxu1 }
 0x131   : > { %v1018_v23 = vmax.f32 %v954_v19, 0.0  ;;  %v1050_v24 = vmax.f32 %v986_v20, 0.0  ;;  %v884_v25 = vmul.f32 %v1702_v15, %v660_v21  ;;  %v916_v26 = vmul.f32 %v1702_v15, %v788_v22 }
 0x132   : > { %v662_v27 = vpop.f32.mrf.mxu0  ;;  %v790_v28 = vpop.f32.mrf.mxu1 }
 0x133   : > { %1082 = vst [vmem:[%s1717_s13 + $0x60] sm:$0xff] %v1018_v23  ;;  %1114 = vst [vmem:[%s1717_s13 + $0x160] sm:$0xff] %v1050_v24  ;;  %v955_v29 = vadd.f32 %v1707_v17, %v884_v25  ;;  %v987_v30 = vadd.f32 %v1707_v17, %v916_v26 }
 0x134   : > { %v665_v31 = vpop.f32.mrf.mxu0  ;;  %v793_v32 = vpop.f32.mrf.mxu1 }
 0x135   : > { %v1019_v33 = vmax.f32 %v955_v29, 0.0  ;;  %v1051_v34 = vmax.f32 %v987_v30, 0.0  ;;  %v885_v35 = vmul.f32 %v1702_v15, %v665_v31  ;;  %v917_v36 = vmul.f32 %v1702_v15, %v793_v32 }
 0x136   : > { %v667_v37 = vpop.f32.mrf.mxu0  ;;  %v795_v38 = vpop.f32.mrf.mxu1 }
 0x137   : > { %1083 = vst [vmem:[%s1717_s13 + $0x68] sm:$0xff] %v1019_v33  ;;  %1115 = vst [vmem:[%s1717_s13 + $0x168] sm:$0xff] %v1051_v34  ;;  %v956_v39 = vadd.f32 %v1707_v17, %v885_v35  ;;  %v988_v40 = vadd.f32 %v1707_v17, %v917_v36 }
 0x138   : > { %v668_v41 = vpop.f32.mrf.mxu0  ;;  %v796_v42 = vpop.f32.mrf.mxu1 }
 0x139   : > { %v1020_v43 = vmax.f32 %v956_v39, 0.0  ;;  %v1052_v44 = vmax.f32 %v988_v40, 0.0  ;;  %v886_v45 = vmul.f32 %v1702_v15, %v668_v41  ;;  %v918_v46 = vmul.f32 %v1702_v15, %v796_v42 }
 0x13a   : > { %v670_v47 = vpop.f32.mrf.mxu0  ;;  %v798_v48 = vpop.f32.mrf.mxu1 }
 0x13b   : > { %1084 = vst [vmem:[%s1717_s13 + $0x70] sm:$0xff] %v1020_v43  ;;  %1116 = vst [vmem:[%s1717_s13 + $0x170] sm:$0xff] %v1052_v44  ;;  %v957_v49 = vadd.f32 %v1707_v17, %v886_v45  ;;  %v989_v50 = vadd.f32 %v1707_v17, %v918_v46 }
 0x13c   : > { %v673_v51 = vpop.f32.mrf.mxu0  ;;  %v801_v52 = vpop.f32.mrf.mxu1 }
 0x13d   : > { %v1021_v53 = vmax.f32 %v957_v49, 0.0  ;;  %v1053_v54 = vmax.f32 %v989_v50, 0.0  ;;  %v887_v55 = vmul.f32 %v1702_v15, %v673_v51  ;;  %v919_v56 = vmul.f32 %v1702_v15, %v801_v52 }
 0x13e   : > { %v675_v57 = vpop.f32.mrf.mxu0  ;;  %v803_v58 = vpop.f32.mrf.mxu1 }
 0x13f   : > { %1085 = vst [vmem:[%s1717_s13 + $0x78] sm:$0xff] %v1021_v53  ;;  %1117 = vst [vmem:[%s1717_s13 + $0x178] sm:$0xff] %v1053_v54  ;;  %v958_v59 = vadd.f32 %v1707_v17, %v887_v55  ;;  %v990_v60 = vadd.f32 %v1707_v17, %v919_v56 }
 0x140   : > { %v676_v61 = vpop.f32.mrf.mxu0  ;;  %v804_v62 = vpop.f32.mrf.mxu1 }
 0x141   : > { %v1022_v63 = vmax.f32 %v958_v59, 0.0  ;;  %v1054_v0 = vmax.f32 %v990_v60, 0.0  ;;  %v888_v1 = vmul.f32 %v1702_v15, %v676_v61  ;;  %v920_v2 = vmul.f32 %v1702_v15, %v804_v62 }
 0x142   : > { %v678_v3 = vpop.f32.mrf.mxu0  ;;  %v806_v4 = vpop.f32.mrf.mxu1 }
 0x143   : > { %1086 = vst [vmem:[%s1717_s13 + $0x80] sm:$0xff] %v1022_v63  ;;  %1118 = vst [vmem:[%s1717_s13 + $0x180] sm:$0xff] %v1054_v0  ;;  %v959_v5 = vadd.f32 %v1707_v17, %v888_v1  ;;  %v991_v6 = vadd.f32 %v1707_v17, %v920_v2 }
 0x144   : > { %v681_v7 = vpop.f32.mrf.mxu0  ;;  %v809_v8 = vpop.f32.mrf.mxu1 }
 0x145   : > { %v1023_v9 = vmax.f32 %v959_v5, 0.0  ;;  %v1055_v10 = vmax.f32 %v991_v6, 0.0  ;;  %v889_v11 = vmul.f32 %v1702_v15, %v681_v7  ;;  %v921_v12 = vmul.f32 %v1702_v15, %v809_v8 }
 0x146   : > { %v683_v13 = vpop.f32.mrf.mxu0  ;;  %v811_v14 = vpop.f32.mrf.mxu1 }
 0x147   : > { %1087 = vst [vmem:[%s1717_s13 + $0x88] sm:$0xff] %v1023_v9  ;;  %1119 = vst [vmem:[%s1717_s13 + $0x188] sm:$0xff] %v1055_v10  ;;  %v960_v16 = vadd.f32 %v1707_v17, %v889_v11  ;;  %v992_v18 = vadd.f32 %v1707_v17, %v921_v12 }
 0x148   : > { %v684_v19 = vpop.f32.mrf.mxu0  ;;  %v812_v20 = vpop.f32.mrf.mxu1 }
 0x149   : > { %v1024_v21 = vmax.f32 %v960_v16, 0.0  ;;  %v1056_v22 = vmax.f32 %v992_v18, 0.0  ;;  %v890_v23 = vmul.f32 %v1702_v15, %v684_v19  ;;  %v922_v24 = vmul.f32 %v1702_v15, %v812_v20 }
 0x14a   : > { %v686_v25 = vpop.f32.mrf.mxu0  ;;  %v814_v26 = vpop.f32.mrf.mxu1 }
 0x14b   : > { %1088 = vst [vmem:[%s1717_s13 + $0x90] sm:$0xff] %v1024_v21  ;;  %1120 = vst [vmem:[%s1717_s13 + $0x190] sm:$0xff] %v1056_v22  ;;  %v961_v27 = vadd.f32 %v1707_v17, %v890_v23  ;;  %v993_v28 = vadd.f32 %v1707_v17, %v922_v24 }
 0x14c   : > { %v689_v29 = vpop.f32.mrf.mxu0  ;;  %v817_v30 = vpop.f32.mrf.mxu1 }
 0x14d   : > { %v1025_v31 = vmax.f32 %v961_v27, 0.0  ;;  %v1057_v32 = vmax.f32 %v993_v28, 0.0  ;;  %v891_v33 = vmul.f32 %v1702_v15, %v689_v29  ;;  %v923_v34 = vmul.f32 %v1702_v15, %v817_v30 }
 0x14e   : > { %v691_v35 = vpop.f32.mrf.mxu0  ;;  %v819_v36 = vpop.f32.mrf.mxu1 }
 0x14f   : > { %1089 = vst [vmem:[%s1717_s13 + $0x98] sm:$0xff] %v1025_v31  ;;  %1121 = vst [vmem:[%s1717_s13 + $0x198] sm:$0xff] %v1057_v32  ;;  %v962_v37 = vadd.f32 %v1707_v17, %v891_v33  ;;  %v994_v38 = vadd.f32 %v1707_v17, %v923_v34 }
 0x150   : > { %v692_v39 = vpop.f32.mrf.mxu0  ;;  %v820_v40 = vpop.f32.mrf.mxu1 }
 0x151   : > { %v1026_v41 = vmax.f32 %v962_v37, 0.0  ;;  %v1058_v42 = vmax.f32 %v994_v38, 0.0  ;;  %v892_v43 = vmul.f32 %v1702_v15, %v692_v39  ;;  %v924_v44 = vmul.f32 %v1702_v15, %v820_v40 }
 0x152   : > { %v694_v45 = vpop.f32.mrf.mxu0  ;;  %v822_v46 = vpop.f32.mrf.mxu1 }
 0x153   : > { %1090 = vst [vmem:[%s1717_s13 + $0xa0] sm:$0xff] %v1026_v41  ;;  %1122 = vst [vmem:[%s1717_s13 + $0x1a0] sm:$0xff] %v1058_v42  ;;  %v963_v47 = vadd.f32 %v1707_v17, %v892_v43  ;;  %v995_v48 = vadd.f32 %v1707_v17, %v924_v44 }
 0x154   : > { %v697_v49 = vpop.f32.mrf.mxu0  ;;  %v825_v50 = vpop.f32.mrf.mxu1 }
 0x155   : > { %v1027_v51 = vmax.f32 %v963_v47, 0.0  ;;  %v1059_v52 = vmax.f32 %v995_v48, 0.0  ;;  %v893_v53 = vmul.f32 %v1702_v15, %v697_v49  ;;  %v925_v54 = vmul.f32 %v1702_v15, %v825_v50 }
 0x156   : > { %v699_v55 = vpop.f32.mrf.mxu0  ;;  %v827_v56 = vpop.f32.mrf.mxu1 }
 0x157   : > { %1091 = vst [vmem:[%s1717_s13 + $0xa8] sm:$0xff] %v1027_v51  ;;  %1123 = vst [vmem:[%s1717_s13 + $0x1a8] sm:$0xff] %v1059_v52  ;;  %v964_v57 = vadd.f32 %v1707_v17, %v893_v53  ;;  %v996_v58 = vadd.f32 %v1707_v17, %v925_v54 }
 0x158   : > { %v700_v59 = vpop.f32.mrf.mxu0  ;;  %v828_v60 = vpop.f32.mrf.mxu1 }
 0x159   : > { %v1028_v61 = vmax.f32 %v964_v57, 0.0  ;;  %v1060_v62 = vmax.f32 %v996_v58, 0.0  ;;  %v894_v63 = vmul.f32 %v1702_v15, %v700_v59  ;;  %v926_v0 = vmul.f32 %v1702_v15, %v828_v60 }
 0x15a   : > { %v702_v1 = vpop.f32.mrf.mxu0  ;;  %v830_v2 = vpop.f32.mrf.mxu1 }
 0x15b   : > { %1092 = vst [vmem:[%s1717_s13 + $0xb0] sm:$0xff] %v1028_v61  ;;  %1124 = vst [vmem:[%s1717_s13 + $0x1b0] sm:$0xff] %v1060_v62  ;;  %v965_v3 = vadd.f32 %v1707_v17, %v894_v63  ;;  %v997_v4 = vadd.f32 %v1707_v17, %v926_v0 }
 0x15c   : > { %v705_v5 = vpop.f32.mrf.mxu0  ;;  %v833_v6 = vpop.f32.mrf.mxu1 }
 0x15d   : > { %v1029_v7 = vmax.f32 %v965_v3, 0.0  ;;  %v1061_v8 = vmax.f32 %v997_v4, 0.0  ;;  %v895_v9 = vmul.f32 %v1702_v15, %v705_v5  ;;  %v927_v10 = vmul.f32 %v1702_v15, %v833_v6 }
 0x15e   : > { %v707_v11 = vpop.f32.mrf.mxu0  ;;  %v835_v12 = vpop.f32.mrf.mxu1 }
 0x15f   : > { %1093 = vst [vmem:[%s1717_s13 + $0xb8] sm:$0xff] %v1029_v7  ;;  %1125 = vst [vmem:[%s1717_s13 + $0x1b8] sm:$0xff] %v1061_v8  ;;  %v966_v13 = vadd.f32 %v1707_v17, %v895_v9  ;;  %v998_v14 = vadd.f32 %v1707_v17, %v927_v10 }
 0x160   : > { %v708_v16 = vpop.f32.mrf.mxu0  ;;  %v836_v18 = vpop.f32.mrf.mxu1 }
 0x161   : > { %v1030_v19 = vmax.f32 %v966_v13, 0.0  ;;  %v1062_v20 = vmax.f32 %v998_v14, 0.0  ;;  %v896_v21 = vmul.f32 %v1702_v15, %v708_v16  ;;  %v928_v22 = vmul.f32 %v1702_v15, %v836_v18 }
 0x162   : > { %v710_v23 = vpop.f32.mrf.mxu0  ;;  %v838_v24 = vpop.f32.mrf.mxu1 }
 0x163   : > { %1094 = vst [vmem:[%s1717_s13 + $0xc0] sm:$0xff] %v1030_v19  ;;  %1126 = vst [vmem:[%s1717_s13 + $0x1c0] sm:$0xff] %v1062_v20  ;;  %v967_v25 = vadd.f32 %v1707_v17, %v896_v21  ;;  %v999_v26 = vadd.f32 %v1707_v17, %v928_v22 }
 0x164   : > { %v713_v27 = vpop.f32.mrf.mxu0  ;;  %v841_v28 = vpop.f32.mrf.mxu1 }
 0x165   : > { %v1031_v29 = vmax.f32 %v967_v25, 0.0  ;;  %v1063_v30 = vmax.f32 %v999_v26, 0.0  ;;  %v897_v31 = vmul.f32 %v1702_v15, %v713_v27  ;;  %v929_v32 = vmul.f32 %v1702_v15, %v841_v28 }
 0x166   : > { %v715_v33 = vpop.f32.mrf.mxu0  ;;  %v843_v34 = vpop.f32.mrf.mxu1 }
 0x167   : > { %1095 = vst [vmem:[%s1717_s13 + $0xc8] sm:$0xff] %v1031_v29  ;;  %1127 = vst [vmem:[%s1717_s13 + $0x1c8] sm:$0xff] %v1063_v30  ;;  %v968_v35 = vadd.f32 %v1707_v17, %v897_v31  ;;  %v1000_v36 = vadd.f32 %v1707_v17, %v929_v32 }
 0x168   : > { %v716_v37 = vpop.f32.mrf.mxu0  ;;  %v844_v38 = vpop.f32.mrf.mxu1 }
 0x169   : > { %v1032_v39 = vmax.f32 %v968_v35, 0.0  ;;  %v1064_v40 = vmax.f32 %v1000_v36, 0.0  ;;  %v898_v41 = vmul.f32 %v1702_v15, %v716_v37  ;;  %v930_v42 = vmul.f32 %v1702_v15, %v844_v38 }
 0x16a   : > { %v718_v43 = vpop.f32.mrf.mxu0  ;;  %v846_v44 = vpop.f32.mrf.mxu1 }
 0x16b   : > { %1096 = vst [vmem:[%s1717_s13 + $0xd0] sm:$0xff] %v1032_v39  ;;  %1128 = vst [vmem:[%s1717_s13 + $0x1d0] sm:$0xff] %v1064_v40  ;;  %v969_v45 = vadd.f32 %v1707_v17, %v898_v41  ;;  %v1001_v46 = vadd.f32 %v1707_v17, %v930_v42 }
 0x16c   : > { %v721_v47 = vpop.f32.mrf.mxu0  ;;  %v849_v48 = vpop.f32.mrf.mxu1 }
 0x16d   : > { %v1033_v49 = vmax.f32 %v969_v45, 0.0  ;;  %v1065_v50 = vmax.f32 %v1001_v46, 0.0  ;;  %v899_v51 = vmul.f32 %v1702_v15, %v721_v47  ;;  %v931_v52 = vmul.f32 %v1702_v15, %v849_v48 }
 0x16e   : > { %v723_v53 = vpop.f32.mrf.mxu0  ;;  %v851_v54 = vpop.f32.mrf.mxu1 }
 0x16f   : > { %1097 = vst [vmem:[%s1717_s13 + $0xd8] sm:$0xff] %v1033_v49  ;;  %1129 = vst [vmem:[%s1717_s13 + $0x1d8] sm:$0xff] %v1065_v50  ;;  %v970_v55 = vadd.f32 %v1707_v17, %v899_v51  ;;  %v1002_v56 = vadd.f32 %v1707_v17, %v931_v52 }
 0x170   : > { %v724_v57 = vpop.f32.mrf.mxu0  ;;  %v852_v58 = vpop.f32.mrf.mxu1 }
 0x171   : > { %v1034_v59 = vmax.f32 %v970_v55, 0.0  ;;  %v1066_v60 = vmax.f32 %v1002_v56, 0.0  ;;  %v900_v61 = vmul.f32 %v1702_v15, %v724_v57  ;;  %v932_v62 = vmul.f32 %v1702_v15, %v852_v58 }
 0x172   : > { %v726_v63 = vpop.f32.mrf.mxu0  ;;  %v854_v0 = vpop.f32.mrf.mxu1 }
 0x173   : > { %1098 = vst [vmem:[%s1717_s13 + $0xe0] sm:$0xff] %v1034_v59  ;;  %1130 = vst [vmem:[%s1717_s13 + $0x1e0] sm:$0xff] %v1066_v60  ;;  %v971_v1 = vadd.f32 %v1707_v17, %v900_v61  ;;  %v1003_v2 = vadd.f32 %v1707_v17, %v932_v62 }
 0x174   : > { %v729_v3 = vpop.f32.mrf.mxu0  ;;  %v857_v4 = vpop.f32.mrf.mxu1 }
 0x175   : > { %v1035_v5 = vmax.f32 %v971_v1, 0.0  ;;  %v1067_v6 = vmax.f32 %v1003_v2, 0.0  ;;  %v901_v7 = vmul.f32 %v1702_v15, %v729_v3  ;;  %v933_v8 = vmul.f32 %v1702_v15, %v857_v4 }
 0x176   : > { %v731_v9 = vpop.f32.mrf.mxu0  ;;  %v859_v10 = vpop.f32.mrf.mxu1 }
 0x177   : > { %1099 = vst [vmem:[%s1717_s13 + $0xe8] sm:$0xff] %v1035_v5  ;;  %1131 = vst [vmem:[%s1717_s13 + $0x1e8] sm:$0xff] %v1067_v6  ;;  %v972_v11 = vadd.f32 %v1707_v17, %v901_v7  ;;  %v1004_v12 = vadd.f32 %v1707_v17, %v933_v8 }
 0x178   : > { %v732_v13 = vpop.f32.mrf.mxu0  ;;  %v860_v14 = vpop.f32.mrf.mxu1 }
 0x179   : > { %v1036_v16 = vmax.f32 %v972_v11, 0.0  ;;  %v1068_v18 = vmax.f32 %v1004_v12, 0.0  ;;  %v902_v19 = vmul.f32 %v1702_v15, %v732_v13  ;;  %v934_v20 = vmul.f32 %v1702_v15, %v860_v14 }
 0x17a   : > { %v734_v21 = vpop.f32.mrf.mxu0  ;;  %v862_v22 = vpop.f32.mrf.mxu1 }
 0x17b   : > { %1100 = vst [vmem:[%s1717_s13 + $0xf0] sm:$0xff] %v1036_v16  ;;  %1132 = vst [vmem:[%s1717_s13 + $0x1f0] sm:$0xff] %v1068_v18  ;;  %v973_v23 = vadd.f32 %v1707_v17, %v902_v19  ;;  %v1005_v24 = vadd.f32 %v1707_v17, %v934_v20 }
 0x17d   : > { %v1037_v15 = vmax.f32 %v973_v23, 0.0  ;;  %v1069_v25 = vmax.f32 %v1005_v24, 0.0 }
 0x17f   : > { %1101 = vst [vmem:[%s1717_s13 + $0xf8] sm:$0xff] %v1037_v15  ;;  %1133 = vst [vmem:[%s1717_s13 + $0x1f8] sm:$0xff] %v1069_v25 }
 0x180   : > { %1355 = shalt.err (!%p1352_p3)
}
 0x181   : > { %s1356_s8 = scalar_lea.hbm %s1908_s29, 8192  ;;  %s1360_s11 = scalar_lea.hbm %s1960_s4, 32768 }
 0x182   : > { %p1357_p4 = scmp.ne.s32.totalorder %s1908_s29, %s1356_s8  ;;  %p1361_p9 = scmp.lt.s32.totalorder %s1908_s29, %s1960_s4 }
 0x183   : > { %p1362_p10 = scmp.lt.s32.totalorder %s1360_s11, %s1356_s8 }
 0x184   : > { %p1358_p7 = pnand %p1357_p4, %p1472_p5 }
 0x185   : > { %p1363_p11 = por %p1362_p10, %p1361_p9 }
 0x186   : > { %p1359_p8 = pneg %p1358_p7 }
 0x188   : > { %p1364_p12 = pnand %p1363_p11, %p1359_p8 }
 0x18a   : > { %1367 = shalt.err (!%p1364_p12)
}
 0x18b   : > { %s1407_s20 = smov 128   ;;  %s1408_s13 = smov 8  }
 0x18c   : > { %1289 = dma.vmem_to_hbm [thread:$0]  (%p1472_p5), %s1910_s23, 8192, %s1908_s29, %s1916_s19, %s1407_s20, %s1407_s20, %s1408_s13  }
 0x18d PF: > { %p1295_p13 = scmp.ge.s32.totalorder %s1402_s18, 2  ;;  %s1163_s22 = sand.u32 1, %s1390_s15  }
 0x18e   : > { %s1164_s27 = scalar_lea.sflag [#allocation3], %s1163_s22 }
 0x18f   : > { %p1292_p0 = pnand %p1295_p13, %p1476_p6 }
 0x191   : > { %p1293_p1 = pneg %p1292_p0 }
 0x193   : > { %1385 = dma.done.wait (%p1293_p1), %s1164_s27, 8192  }
 0x194   : > { %1387 = vsyncadd (%p1293_p1), %s1164_s27, 4294959104  ;;  %p14_p2 = scmp.ge.s32.totalorder %s1459_s21, 6   ;;  %s1963_s15 = smov %s1394_s16 }
 0x195   : > { %s1964_s16 = smov %s1398_s17  ;;  %s1965_s17 = smov %s1470_s24 }
 0x196   : > { %s1966_s18 = smov %s1459_s21  ;;  %16 = sbr.rel (!%p14_p2) target bundleno = 3 (0x3), region = 71 }
 0x19b   :  { %1169 = vsyncpa [#allocation3], 1 }
 0x19c   :  { %1171 = vsyncpa [#allocation3 + $0x1], 1 }

</bundles_post_ra>
